<compile_context>
chip_gen: v7x
topology: tpu7x:2x2x1
jax: 0.10.0
libtpu: 0.0.40
codegen_flags: <defaults>
</compile_context>

<pallas_src>
import jax
import jax.numpy as jnp
from jax.experimental import pallas as pl
from jax.experimental.pallas import tpu as pltpu

_LANE = 128
_MAX_BLOCK_B = 8192        # bounds per-grid-step f32 intermediates (~4-8 MiB)


def _round_up(n: int, m: int) -> int:
    return ((n + m - 1) // m) * m


# ---------------------------------------------------------------------------
# Hardware query / feature probe (cached).
# ---------------------------------------------------------------------------
def _vmem_capacity_bytes() -> int:
    """Physical VMEM per TensorCore (128 MiB v5e/v6e, 64 MiB v7x)."""
    try:
        cap = getattr(pltpu.get_tpu_info(), "vmem_capacity_bytes", None)
        if cap:
            return int(cap)
    except Exception:  # info query only; fall back conservatively
        pass
    return 64 * 2**20  # conservative default (v7x per-TC)


_BUFFERED_OK = None


def _buffered_supported() -> bool:
    """Probe pipeline_mode=pl.Buffered(1) once on a tiny kernel, so a failure
    here never masks a real compile error in the encoder kernel itself."""
    global _BUFFERED_OK
    if _BUFFERED_OK is not None:
        return _BUFFERED_OK
    if not hasattr(pl, "Buffered"):
        _BUFFERED_OK = False
        return False

    def _probe(a_ref, w_ref, o_ref):
        o_ref[...] = a_ref[...] + w_ref[...]

    try:
        call = pl.pallas_call(
            _probe,
            out_shape=jax.ShapeDtypeStruct((16, _LANE), jnp.float32),
            grid_spec=pltpu.PrefetchScalarGridSpec(
                num_scalar_prefetch=0,
                grid=(2,),
                in_specs=[
                    pl.BlockSpec((8, _LANE), lambda i: (i, 0)),
                    pl.BlockSpec((8, _LANE), lambda i: (0, 0),
                                 pipeline_mode=pl.Buffered(1)),
                ],
                out_specs=pl.BlockSpec((8, _LANE), lambda i: (i, 0)),
            ),
        )
        jax.block_until_ready(call(jnp.zeros((16, _LANE), jnp.float32),
                                   jnp.zeros((8, _LANE), jnp.float32)))
        _BUFFERED_OK = True
    except Exception:  # probe only; fall back to double-buffered weights
        _BUFFERED_OK = False
    return _BUFFERED_OK


# ---------------------------------------------------------------------------
# Kernel.
# ---------------------------------------------------------------------------
def _encoder_kernel(x_ref, w1_ref, b1_ref, w2_ref, b2_ref, o_ref):
    # Cast x to the weights' compute dtype in-kernel (no wrapper-side cast pass
    # re-streaming x through HBM).
    x = x_ref[...].astype(w1_ref.dtype)
    h = jnp.dot(x, w1_ref[...], preferred_element_type=jnp.float32)      # MXU
    h = jnp.tanh(h + b1_ref[...])                                        # VPU+EUP, f32
    y = jnp.dot(h.astype(w2_ref.dtype), w2_ref[...],
                preferred_element_type=jnp.float32)                      # MXU
    y = jax.nn.sigmoid(y + b2_ref[...])                                  # EUP, f32
    o_ref[...] = y.astype(o_ref.dtype)


# ---------------------------------------------------------------------------
# One-time weight preparation (hoisted out of the per-call path).
# ---------------------------------------------------------------------------
def prepare_params(w1, b1, w2, b2, *, compute_dtype=jnp.bfloat16):
    """Cast W1/W2 to the MXU compute dtype, zero-pad dim_Hid up to a multiple
    of 128 lanes (lane-dense h / second-GEMM K), keep biases in f32 rows.

    Padding is mathematically inert: padded hidden units have zero weights and
    zero bias, tanh(0) = 0, and their W2 rows are zero.
    Call once; reuse the returned tuple across simgle_encoder calls.
    """
    compute_dtype = jnp.dtype(compute_dtype)
    dim_in, dim_hid = w1.shape
    dim_out = w2.shape[1]
    dim_hid_p = _round_up(dim_hid, _LANE)

    w1c = jnp.asarray(w1, compute_dtype)
    w2c = jnp.asarray(w2, compute_dtype)
    b1f = jnp.asarray(b1, jnp.float32).reshape(1, dim_hid)
    b2f = jnp.asarray(b2, jnp.float32).reshape(1, dim_out)
    if dim_hid_p != dim_hid:
        w1c = jnp.pad(w1c, ((0, 0), (0, dim_hid_p - dim_hid)))
        b1f = jnp.pad(b1f, ((0, 0), (0, dim_hid_p - dim_hid)))
        w2c = jnp.pad(w2c, ((0, dim_hid_p - dim_hid), (0, 0)))
    return w1c, b1f, w2c, b2f


# ---------------------------------------------------------------------------
# Encoder forward.
# ---------------------------------------------------------------------------
def simgle_encoder(x, params, *, block_b=None):
    """y = sigmoid(tanh(x @ W1 + b1) @ W2 + b2); params from prepare_params().

    x: [B, dim_In] (any float dtype; cast to the compute dtype in-kernel).
    Returns [B, dim_Out] in x.dtype.
    """
    w1c, b1f, w2c, b2f = params
    B, dim_in = x.shape
    dim_in_w, dim_hid_p = w1c.shape
    dim_out = w2c.shape[1]
    assert dim_in == dim_in_w, "x feature dim does not match W1"
    out_dtype = x.dtype

    x_size = jnp.dtype(x.dtype).itemsize
    o_size = jnp.dtype(out_dtype).itemsize
    c_size = jnp.dtype(w1c.dtype).itemsize

    single_buffer_weights = _buffered_supported()
    wbuf = 1 if single_buffer_weights else 2
    weight_vmem = wbuf * ((dim_in * dim_hid_p + dim_hid_p * dim_out) * c_size
                          + (dim_hid_p + dim_out) * 4)

    # --- batch tiling (VMEM-budget driven) ---------------------------------
    pack = 16 if min(x_size, o_size) == 2 else 8      # sublane pack for batch
    vmem_budget = int(0.85 * _vmem_capacity_bytes())  # ~54 MiB v7x, ~108 MiB v5e/v6e
    if block_b is None:
        # Per-batch-row VMEM footprint: double-buffered x/out tiles + in-kernel
        # compute-dtype casts + f32 intermediates (h, y).
        row_bytes = (2 * dim_in * x_size + 2 * dim_out * o_size
                     + (dim_in + dim_hid_p) * c_size
                     + (dim_hid_p + dim_out) * 4)
        avail = max(vmem_budget - weight_vmem, 2 * 2**20)
        block_b = min((avail // 2) // max(row_bytes, 1), _MAX_BLOCK_B)
    # Keep >= 2 grid steps so the "parallel" batch axis can shard across the
    # two TensorCores on v7x (costs only ~0.35 us extra elsewhere).
    block_b = min(int(block_b), _round_up(pl.cdiv(B, 2), pack))
    block_b = max(pack, (block_b // pack) * pack)
    grid = (pl.cdiv(B, block_b),)        # ragged last block: writes are masked

    # --- scheduler hints -----------------------------------------------------
    flops = 2 * B * (dim_in * dim_hid_p + dim_hid_p * dim_out)
    transcendentals = B * (dim_hid_p + dim_out)                 # tanh + sigmoid
    bytes_accessed = (B * dim_in * x_size
                      + (dim_in * dim_hid_p + dim_hid_p * dim_out) * c_size
                      + (dim_hid_p + dim_out) * 4
                      + B * dim_out * o_size)
    cost = pl.CostEstimate(flops=flops, transcendentals=transcendentals,
                           bytes_accessed=bytes_accessed)

    # VMEM limit: actual need with 2x headroom, clamped to ~85% of this
    # generation's physical VMEM (raises the old flat 48 MiB clamp on v5e/v6e,
    # stays under ~56 MiB on v7x).
    need = (block_b * (2 * dim_in * x_size + 2 * dim_out * o_size
                       + (dim_in + dim_hid_p) * c_size
                       + (dim_hid_p + dim_out) * 4)
            + weight_vmem)
    vmem_limit = int(min(max(2 * need, 16 * 2**20), vmem_budget))

    # TODO(synk): add a K-reduction grid axis (tile dim_In/dim_Hid with an f32
    # VMEM accumulator + pl.when init/finalize) once resident weights exceed
    # ~40% of this generation's VMEM (~24 MiB on v7x, ~48 MiB on v5e/v6e;
    # halve that if the Buffered(1) probe fails and weights double-buffer).
    wkw = {"pipeline_mode": pl.Buffered(1)} if single_buffer_weights else {}
    call = pl.pallas_call(
        _encoder_kernel,
        out_shape=jax.ShapeDtypeStruct((B, dim_out), out_dtype),
        grid_spec=pltpu.PrefetchScalarGridSpec(
            num_scalar_prefetch=0,
            grid=grid,
            in_specs=[
                pl.BlockSpec((block_b, dim_in), lambda i: (i, 0)),            # x tile
                pl.BlockSpec((dim_in, dim_hid_p), lambda i: (0, 0), **wkw),   # W1
                pl.BlockSpec((1, dim_hid_p), lambda i: (0, 0), **wkw),        # b1
                pl.BlockSpec((dim_hid_p, dim_out), lambda i: (0, 0), **wkw),  # W2
                pl.BlockSpec((1, dim_out), lambda i: (0, 0), **wkw),          # b2
            ],
            out_specs=pl.BlockSpec((block_b, dim_out), lambda i: (i, 0)),
        ),
        compiler_params=pltpu.CompilerParams(
            dimension_semantics=("parallel",),
            vmem_limit_bytes=vmem_limit,
        ),
        cost_estimate=cost,
    )
    return call(x, w1c, b1f, w2c, b2f)


def init_params(key, dim_in, dim_hid, dim_out, dtype=jnp.float32):
    """Deterministic init mimicking nn.Linear (uniform(-1/sqrt(fan_in), +))."""
    k1, k2, k3, k4 = jax.random.split(key, 4)
    lim1 = 1.0 / (dim_in ** 0.5)
    lim2 = 1.0 / (dim_hid ** 0.5)
    # PyTorch stores weight as [out, in]; we keep the transposed [in, out] layout.
    w1 = jax.random.uniform(k1, (dim_in, dim_hid), dtype, -lim1, lim1)
    b1 = jax.random.uniform(k2, (1, dim_hid), dtype, -lim1, lim1)
    w2 = jax.random.uniform(k3, (dim_hid, dim_out), dtype, -lim2, lim2)
    b2 = jax.random.uniform(k4, (1, dim_out), dtype, -lim2, lim2)
    return w1, b1, w2, b2


if __name__ == "__main__":
    key = jax.random.PRNGKey(0)
    kx, kp = jax.random.split(key)

    # Small shapes consistent with the module.  B is deliberately not a multiple
    # of the tile (exercises the ragged last batch block) and dim_Out < 128
    # (exercises the unpadded masked-store output path).
    B, dim_in, dim_hid, dim_out = 10, 32, 64, 16
    x = jax.random.normal(kx, (B, dim_in), jnp.float32)
    w1, b1, w2, b2 = init_params(kp, dim_in, dim_hid, dim_out)

    ref = jax.nn.sigmoid(jnp.tanh(x @ w1 + b1) @ w2 + b2)

    # f32 compute path: tight tolerance vs the plain-JAX reference.
    p_f32 = prepare_params(w1, b1, w2, b2, compute_dtype=jnp.float32)
    out_f32 = jax.block_until_ready(simgle_encoder(x, p_f32))
    assert out_f32.shape == (B, dim_out)
    assert jnp.allclose(out_f32, ref, atol=1e-5, rtol=1e-5)

    # Default perf path (bf16 MXU matmuls, f32 accumulation): looser tolerance.
    p_bf16 = prepare_params(w1, b1, w2, b2, compute_dtype=jnp.bfloat16)
    out_bf16 = jax.block_until_ready(simgle_encoder(x, p_bf16))
    assert out_bf16.shape == (B, dim_out)
    assert jnp.allclose(out_bf16, ref, atol=2e-2, rtol=2e-2)

    print("KERNEL_OK")
</pallas_src>

<mosaic_0001>
module attributes {stable_mosaic.version = 11 : i64} {
  func.func @_probe(%arg0: i32, %arg1: memref<8x128xf32, #tpu.memory_space<vmem>>, %arg2: memref<8x128xf32, #tpu.memory_space<vmem>>, %arg3: memref<8x128xf32, #tpu.memory_space<vmem>>) attributes {dimension_semantics = [#tpu.dimension_semantics<arbitrary>], iteration_bounds = array<i64: 2>, scalar_prefetch = 0 : i64, scratch_operands = 0 : i64, tpu.core_type = #tpu.core_type<tc>, window_params = [{transform_indices = @transform_0, window_bounds = array<i64: 8, 128>}, {pipeline_mode = #tpu.pipeline_mode<synchronous>, transform_indices = @transform_1, window_bounds = array<i64: 8, 128>}, {transform_indices = @transform_2, window_bounds = array<i64: 8, 128>}]} {
    %c0 = arith.constant 0 : index
    %c0_0 = arith.constant 0 : index
    %0 = vector.load %arg1[%c0, %c0_0] : memref<8x128xf32, #tpu.memory_space<vmem>>, vector<8x128xf32>
    %c0_1 = arith.constant 0 : index
    %c0_2 = arith.constant 0 : index
    %1 = vector.load %arg2[%c0_1, %c0_2] : memref<8x128xf32, #tpu.memory_space<vmem>>, vector<8x128xf32>
    %2 = arith.addf %0, %1 : vector<8x128xf32>
    %c0_3 = arith.constant 0 : index
    %c0_4 = arith.constant 0 : index
    %3 = vector.load %arg3[%c0_3, %c0_4] : memref<8x128xf32, #tpu.memory_space<vmem>>, vector<8x128xf32>
    tpu.vector_store %arg3[%c0_3, %c0_4], %2 {strides = array<i32>} : memref<8x128xf32, #tpu.memory_space<vmem>>, vector<8x128xf32>,
    return
  }
  func.func @transform_0(%arg0: i32) -> (i32, i32) {
    %c0_i32 = arith.constant 0 : i32
    %c0_i32_0 = arith.constant 0 : i32
    return %arg0, %c0_i32 : i32, i32
  }
  func.func @transform_1(%arg0: i32) -> (i32, i32) {
    %c0_i32 = arith.constant 0 : i32
    %c0_i32_0 = arith.constant 0 : i32
    %c0_i32_1 = arith.constant 0 : i32
    return %c0_i32, %c0_i32_0 : i32, i32
  }
  func.func @transform_2(%arg0: i32) -> (i32, i32) {
    %c0_i32 = arith.constant 0 : i32
    %c0_i32_0 = arith.constant 0 : i32
    return %arg0, %c0_i32 : i32, i32
  }
}

module attributes {stable_mosaic.version = 11 : i64} {
  func.func @_encoder_kernel(%arg0: i32, %arg1: memref<8x32xf32, #tpu.memory_space<vmem>>, %arg2: memref<32x128xf32, #tpu.memory_space<vmem>>, %arg3: memref<1x128xf32, #tpu.memory_space<vmem>>, %arg4: memref<128x16xf32, #tpu.memory_space<vmem>>, %arg5: memref<1x16xf32, #tpu.memory_space<vmem>>, %arg6: memref<8x16xf32, #tpu.memory_space<vmem>>) attributes {dimension_semantics = [#tpu.dimension_semantics<parallel>], iteration_bounds = array<i64: 2>, scalar_prefetch = 0 : i64, scratch_operands = 0 : i64, tpu.core_type = #tpu.core_type<tc>, window_params = [{transform_indices = @transform_0, window_bounds = array<i64: 8, 32>}, {pipeline_mode = #tpu.pipeline_mode<synchronous>, transform_indices = @transform_1, window_bounds = array<i64: 32, 128>}, {pipeline_mode = #tpu.pipeline_mode<synchronous>, transform_indices = @transform_2, window_bounds = array<i64: 1, 128>}, {pipeline_mode = #tpu.pipeline_mode<synchronous>, transform_indices = @transform_3, window_bounds = array<i64: 128, 16>}, {pipeline_mode = #tpu.pipeline_mode<synchronous>, transform_indices = @transform_4, window_bounds = array<i64: 1, 16>}, {transform_indices = @transform_5, window_bounds = array<i64: 8, 16>}]} {
    %c0 = arith.constant 0 : index
    %c0_0 = arith.constant 0 : index
    %0 = vector.load %arg1[%c0, %c0_0] : memref<8x32xf32, #tpu.memory_space<vmem>>, vector<8x32xf32>
    %c0_1 = arith.constant 0 : index
    %c0_2 = arith.constant 0 : index
    %1 = vector.load %arg2[%c0_1, %c0_2] : memref<32x128xf32, #tpu.memory_space<vmem>>, vector<32x128xf32>
    %cst = arith.constant dense<0.000000e+00> : vector<8x128xf32>
    %2 = tpu.matmul %0, %1, %cst {dimension_numbers = #tpu.dot_dimension_numbers<[1], [0], [0], [1], [0, 0, 1, 1], [], []>} : vector<8x32xf32>, vector<32x128xf32>, vector<8x128xf32> -> vector<8x128xf32>
    %c0_3 = arith.constant 0 : index
    %c0_4 = arith.constant 0 : index
    %3 = vector.load %arg3[%c0_3, %c0_4] : memref<1x128xf32, #tpu.memory_space<vmem>>, vector<1x128xf32>
    %4 = vector.broadcast %3 : vector<1x128xf32> to vector<8x128xf32>
    %5 = arith.addf %2, %4 : vector<8x128xf32>
    %6 = math.tanh %5 : vector<8x128xf32>
    %c0_5 = arith.constant 0 : index
    %c0_6 = arith.constant 0 : index
    %7 = vector.load %arg4[%c0_5, %c0_6] : memref<128x16xf32, #tpu.memory_space<vmem>>, vector<128x16xf32>
    %cst_7 = arith.constant dense<0.000000e+00> : vector<8x16xf32>
    %8 = tpu.matmul %6, %7, %cst_7 {dimension_numbers = #tpu.dot_dimension_numbers<[1], [0], [0], [1], [0, 0, 1, 1], [], []>} : vector<8x128xf32>, vector<128x16xf32>, vector<8x16xf32> -> vector<8x16xf32>
    %c0_8 = arith.constant 0 : index
    %c0_9 = arith.constant 0 : index
    %9 = vector.load %arg5[%c0_8, %c0_9] : memref<1x16xf32, #tpu.memory_space<vmem>>, vector<1x16xf32>
    %10 = vector.broadcast %9 : vector<1x16xf32> to vector<8x16xf32>
    %11 = arith.addf %8, %10 : vector<8x16xf32>
    %12 = arith.negf %11 : vector<8x16xf32>
    %13 = math.exp %12 : vector<8x16xf32>
    %cst_10 = arith.constant 1.000000e+00 : f32
    %14 = vector.broadcast %cst_10 : f32 to vector<8x16xf32>
    %15 = arith.addf %14, %13 : vector<8x16xf32>
    %16 = arith.divf %14, %15 : vector<8x16xf32>
    %c0_11 = arith.constant 0 : index
    %c0_12 = arith.constant 0 : index
    %17 = vector.load %arg6[%c0_11, %c0_12] : memref<8x16xf32, #tpu.memory_space<vmem>>, vector<8x16xf32>
    tpu.vector_store %arg6[%c0_11, %c0_12], %16 {strides = array<i32>} : memref<8x16xf32, #tpu.memory_space<vmem>>, vector<8x16xf32>,
    return
  }
  func.func @transform_0(%arg0: i32) -> (i32, i32) {
    %c0_i32 = arith.constant 0 : i32
    %c0_i32_0 = arith.constant 0 : i32
    return %arg0, %c0_i32 : i32, i32
  }
  func.func @transform_1(%arg0: i32) -> (i32, i32) {
    %c0_i32 = arith.constant 0 : i32
    %c0_i32_0 = arith.constant 0 : i32
    %c0_i32_1 = arith.constant 0 : i32
    return %c0_i32, %c0_i32_0 : i32, i32
  }
  func.func @transform_2(%arg0: i32) -> (i32, i32) {
    %c0_i32 = arith.constant 0 : i32
    %c0_i32_0 = arith.constant 0 : i32
    %c0_i32_1 = arith.constant 0 : i32
    return %c0_i32, %c0_i32_0 : i32, i32
  }
  func.func @transform_3(%arg0: i32) -> (i32, i32) {
    %c0_i32 = arith.constant 0 : i32
    %c0_i32_0 = arith.constant 0 : i32
    %c0_i32_1 = arith.constant 0 : i32
    return %c0_i32, %c0_i32_0 : i32, i32
  }
  func.func @transform_4(%arg0: i32) -> (i32, i32) {
    %c0_i32 = arith.constant 0 : i32
    %c0_i32_0 = arith.constant 0 : i32
    %c0_i32_1 = arith.constant 0 : i32
    return %c0_i32, %c0_i32_0 : i32, i32
  }
  func.func @transform_5(%arg0: i32) -> (i32, i32) {
    %c0_i32 = arith.constant 0 : i32
    %c0_i32_0 = arith.constant 0 : i32
    return %arg0, %c0_i32 : i32, i32
  }
}

</mosaic_0001>

<bundles_post_ra>
// kernel: tpu_custom_call.1
= control target key start
LH: loop header
LB: loop body
LE: loop exit
PB: predicated region body
PF: predicated region fallthrough
CT: control target
= control target key end

     0   :  { %7 = vsyncpa [#allocation3], 0  ;;  %s690_s0 = inlined_call_operand.hbm [shape: f32[16,128], index: 0, kind: input, shape index: {}]   ;;  %s691_s1 = inlined_call_operand.hbm [shape: f32[8,128], index: 1, kind: input, shape index: {}]   ;;  %s692_s2 = inlined_call_operand.hbm [shape: f32[16,128], index: 2, kind: output, shape index: {}]  }
   0x1   :  { %9 = vsyncpa [#allocation3 + $0x1], 0 }
   0x2   :  { %10 = vsyncpa [#allocation6], 0 }
   0x3   :  { %11 = vsyncpa [#allocation4], 0 }
   0x4   :  { %13 = vsyncpa [#allocation4 + $0x1], 0  ;;  %s489_s9 = smov 0   ;;  %s491_s10 = smov 0  }
   0x5   :  { %s493_s11 = smov 0   ;;  %s495_s12 = smov 0  }
   0x6 LB: > { %s510_s13 = sadd.s32 4294967295, %s469_s12   ;;  %s270_s14 = sadd.s32 4294967294, %s469_s12   ;;  %s469_s12 = sphi %s495_s12, %s716_s12   ;;  %s465_s11 = sphi %s493_s11, %s715_s11   ;;  %s461_s10 = sphi %s491_s10, %s714_s10   ;;  %s457_s9 = sphi %s489_s9, %s713_s9  }
   0x7   : > { %p39_p0 = scmp.ne.s32.totalorder %s461_s10, %s457_s9  ;;  %p693_p1 = scmp.eq.s32.totalorder %s510_s13, 0 }
   0x8   : > { %p90_p3 = scmp.eq.s32.totalorder %s270_s14, 1  ;;  %p271_p5 = scmp.ge.s32.totalorder %s469_s12, 1 }
   0x9   : > { %p519_p4 = por %p693_p1, %p39_p0  ;;  %p97_p7 = scmp.lt.s32.totalorder %s469_s12, 3 }
   0xa   : > { %p524_p6 = por %p90_p3, %p39_p0  ;;  %s471_s18 = smov [#allocation5]  }
   0xb   : > { %s696_s15 = scalar_select %p519_p4, 1, 0 }
   0xc   : > { %s697_s16 = scalar_select %p524_p6, 1, 0 }
   0xd   : > { %p529_p8 = pnand %p271_p5, %p97_p7  ;;  %s110_s19 = sshll.u32 %s471_s18, 4  ;;  %s111_s19 = int_to_ptr.vmem [resolvable:$true] %s110_s19 }
   0xe   : > { %s537_s20 = sadd.s32 1, %s469_s12   ;;  %s26_s24 = sadd.s32 1, %s465_s11 }
   0xf   : > { %s698_s17 = scalar_select %p529_p8, 1, 0 }
  0x10   : > { %p292_p10 = pneg %p529_p8  ;;  %s23_s22 = ssub.s32 %s469_s12, %s537_s20 }
  0x11   : > { %p547_p12 = scmp.eq.s32.totalorder %s23_s22, 0  ;;  %s341_s27 = scalar_lea.hbm %s691_s1, 128 }
  0x12   : > { %p541_p11 = pnand %p292_p10, %p693_p1  ;;  %p342_p0 = scmp.ne.s32.totalorder %s691_s1, %s341_s27 }
  0x13   : > { %s700_s23 = scalar_select %p547_p12, 1, 0 }
  0x14   : > { %p343_p3 = pneg %p541_p11  ;;  %p348_p10 = scmp.lt.u32.totalorder %s341_s27, %s691_s1 }
  0x16   : > { %p344_p5 = pnand %p343_p3, %p342_p0 }
  0x18   : > { %p345_p7 = pneg %p344_p5 }
  0x1a   : > { %p350_p9 = pnand %p348_p10, %p345_p7 }
  0x1c   : > { %353 = shalt.err (!%p350_p9)
}
  0x1d   : > { %s354_s4 = scalar_lea.vmem %s111_s19, 128  ;;  %p362_p6 = scmp.lt.s32.totalorder %s111_s19, %s111_s19 }
  0x1e   : > { %p355_p1 = scmp.ne.s32.totalorder %s111_s19, %s354_s4  ;;  %p363_p4 = scmp.lt.s32.totalorder %s354_s4, %s354_s4 }
  0x20   : > { %p357_p2 = pnand %p355_p1, %p343_p3  ;;  %p364_p8 = por %p363_p4, %p362_p6 }
  0x22   : > { %p358_p13 = pneg %p357_p2 }
  0x24   : > { %p365_p12 = pnand %p364_p8, %p358_p13 }
  0x26   : > { %368 = shalt.err (!%p365_p12)
}
  0x27   : > { %295 = dma.hbm_to_vmem [thread:$0]  (!%p541_p11), %s691_s1, 128, %s111_s19, [#allocation6]  }
  0x28   : > { %p701_p1 = scmp.ne.s32.totalorder %s700_s23, 0  ;;  %p34_p2 = scmp.eq.s32.totalorder %s469_s12, 0 }
  0x29   : > { %p702_p4 = scmp.ne.s32.totalorder %s465_s11, %s461_s10  ;;  %p703_p6 = scmp.eq.s32.totalorder %s510_s13, 1 }
  0x2a   : > { %s573_s7 = scalar_select %p701_p1, %s465_s11, %s26_s24  }
  0x2b   : > { %p581_p8 = por %p703_p6, %p702_p4  ;;  %p305_p9 = scmp.lt.s32.totalorder %s469_s12, 2 }
  0x2c   : > { %s121_s14 = sand.u32 1, %s465_s11   ;;  %p705_p12 = pmov %p702_p4 }
  0x2d   : > { %s274_s18 = sshll.u32 %s121_s14, 3  ;;  %s275_s21 = sshll.u32 %s469_s12, 7 }
  0x2e   : > { %p35_p13 = por %p34_p2, %p705_p12  ;;  %s594_s19 = scalar_lea.hbm %s690_s0, %s275_s21 }
  0x2f   : > { %s125_s23 = scalar_lea.vmem [#allocation2], %s274_s18  ;;  %s122_s27 = scalar_lea.sflag [#allocation3], %s121_s14 }
  0x30   : > { %s132_s24 = sshll.u32 %s125_s23, 4  ;;  %p596_p11 = pnand %p305_p9, %p35_p13  ;;  %s600_s24 = int_to_ptr.vmem [resolvable:$true] %s132_s24 }
  0x31   : > { %s369_s28 = scalar_lea.hbm %s594_s19, 128  ;;  %s374_s3 = scalar_lea.hbm %s690_s0, 256 }
  0x32   : > { %p370_p0 = scmp.ne.s32.totalorder %s594_s19, %s369_s28  ;;  %p371_p3 = pneg %p596_p11 }
  0x33   : > { %p375_p10 = scmp.lt.u32.totalorder %s594_s19, %s690_s0  ;;  %p376_p1 = scmp.lt.u32.totalorder %s374_s3, %s369_s28 }
  0x34   : > { %p372_p5 = pnand %p371_p3, %p370_p0  ;;  %p378_p4 = scmp.lt.u32.totalorder %s369_s28, %s594_s19 }
  0x35   : > { %p377_p2 = por %p376_p1, %p375_p10 }
  0x36   : > { %p373_p7 = pneg %p372_p5 }
  0x37   : > { %p379_p6 = por %p378_p4, %p377_p2 }
  0x39   : > { %p380_p9 = pnand %p379_p6, %p373_p7 }
  0x3b   : > { %383 = shalt.err (!%p380_p9)
}
  0x3c   : > { %s384_s6 = scalar_lea.vmem %s600_s24, 128  ;;  %s472_s14 = smov [#allocation2]  }
  0x3d   : > { %p385_p12 = scmp.ne.s32.totalorder %s600_s24, %s384_s6  ;;  %s389_s18 = sshll.u32 %s472_s14, 4  ;;  %s390_s18 = int_to_ptr.vmem [resolvable:$false] %s389_s18 }
  0x3e   : > { %s391_s21 = scalar_lea.vmem %s390_s18, 256  ;;  %p392_p5 = scmp.lt.s32.totalorder %s600_s24, %s390_s18 }
  0x3f   : > { %p387_p13 = pnand %p385_p12, %p371_p3  ;;  %p393_p10 = scmp.lt.s32.totalorder %s391_s21, %s384_s6 }
  0x41   : > { %p388_p0 = pneg %p387_p13  ;;  %p394_p1 = por %p393_p10, %p392_p5 }
  0x43   : > { %p395_p2 = pnand %p394_p1, %p388_p0 }
  0x45   : > { %398 = shalt.err (!%p395_p2)
}
  0x46   : > { %299 = dma.hbm_to_vmem [thread:$0]  (!%p596_p11), %s594_s19, 128, %s600_s24, %s122_s27  }
  0x47   : > { %p707_p7 = scmp.ne.s32.totalorder %s698_s17, 0 }
  0x48   : > { %s630_s22 = sand.u32 (!%p707_p7), 1, %s461_s10   ;;  %p708_p3 = scmp.ne.s32.totalorder (!%p707_p7), %s696_s15, 0 }
  0x49   : > { %141 = sbr.rel (%p707_p7) target bundleno = 109 (0x6d), region = 28  ;;  %s277_s25 = sshll.u32 (!%p707_p7), %s630_s22, 3 }
  0x4a   : > { %s144_s23 = scalar_lea.sflag (!%p707_p7), [#allocation3], %s630_s22  ;;  %s147_s28 = scalar_lea.vmem (!%p707_p7), [#allocation2], %s277_s25 }
  0x50   : > { %444 = dma.done.wait (%p708_p3), %s144_s23, 128  }
  0x51   : > { %446 = vsyncadd (%p708_p3), %s144_s23, 4294967168  ;;  %p709_p4 = scmp.eq.s32.totalorder %s510_s13, 0 }
  0x53   : > { %448 = dma.done.wait (%p709_p4), [#allocation6], 128   ;;  %p710_p11 = pmov %p709_p4 }
  0x54   : > { %s171_s17 = scalar_lea.vmem [#allocation7], %s277_s25  ;;  %s281_s24 = sshll.u32 %s510_s13, 7  ;;  %v172_v0 = vld [vmem:[%s147_s28] sm:$0xff]  ;;  %v173_v1 = vld [vmem:[#allocation5] sm:$0xff] }
  0x55   : > { %450 = vsyncadd (%p710_p11), [#allocation6], 4294967168  ;;  %s190_s19 = sshll.u32 %s171_s17, 4  ;;  %v174_v2 = vadd.f32 %v173_v1, %v172_v0  ;;  %s648_s27 = scalar_lea.hbm %s692_s2, %s281_s24  ;;  %s643_s19 = int_to_ptr.vmem [resolvable:$true] %s190_s19 }
  0x56   : > { %s177_s29 = scalar_lea.sflag [#allocation4], %s630_s22  ;;  %s399_s30 = scalar_lea.vmem %s643_s19, 128 }
  0x57   : > { %175 = vst [vmem:[%s171_s17] sm:$0xff] %v174_v2  ;;  %p400_p6 = scmp.ne.s32.totalorder %s643_s19, %s399_s30  ;;  %s473_s13 = smov [#allocation7]  }
  0x58   : > { %s403_s3 = sshll.u32 %s473_s13, 4  ;;  %s404_s3 = int_to_ptr.vmem [resolvable:$false] %s403_s3 }
  0x59   : > { %p401_p9 = pnand %p400_p6, %p581_p8  ;;  %s405_s4 = scalar_lea.vmem %s404_s3, 256 }
  0x5a   : > { %p406_p13 = scmp.lt.s32.totalorder %s643_s19, %s404_s3  ;;  %p407_p0 = scmp.lt.s32.totalorder %s405_s4, %s399_s30 }
  0x5b   : > { %p402_p12 = pneg %p401_p9 }
  0x5c   : > { %p408_p5 = por %p407_p0, %p406_p13 }
  0x5e   : > { %p409_p10 = pnand %p408_p5, %p402_p12 }
  0x60   : > { %412 = shalt.err (!%p409_p10)
}
  0x61   : > { %s413_s5 = scalar_lea.hbm %s648_s27, 128  ;;  %s417_s18 = scalar_lea.hbm %s692_s2, 256 }
  0x62   : > { %p414_p1 = scmp.ne.s32.totalorder %s648_s27, %s413_s5  ;;  %p418_p3 = scmp.lt.u32.totalorder %s648_s27, %s692_s2 }
  0x63   : > { %p419_p4 = scmp.lt.u32.totalorder %s417_s18, %s413_s5  ;;  %p421_p6 = scmp.lt.u32.totalorder %s413_s5, %s648_s27 }
  0x64   : > { %p415_p2 = pnand %p414_p1, %p581_p8 }
  0x65   : > { %p420_p11 = por %p419_p4, %p418_p3 }
  0x66   : > { %p416_p7 = pneg %p415_p2 }
  0x67   : > { %p422_p9 = por %p421_p6, %p420_p11 }
  0x69   : > { %p423_p12 = pnand %p422_p9, %p416_p7 }
  0x6b   : > { %426 = shalt.err (!%p423_p12)
}
  0x6c   : > { %290 = dma.vmem_to_hbm [thread:$0]  (%p581_p8), %s643_s19, 128, %s648_s27, %s177_s29  }
  0x6d PF: > { %s202_s25 = sand.u32 1, %s457_s9   ;;  %p711_p13 = scmp.ne.s32.totalorder %s697_s16, 0 }
  0x6e   : > { %p712_p0 = scmp.ge.s32.totalorder %s469_s12, 2  ;;  %s203_s23 = scalar_lea.sflag [#allocation4], %s202_s25 }
  0x70   : > { %p301_p5 = pnand %p712_p0, %p711_p13 }
  0x72   : > { %452 = dma.done.wait (!%p301_p5), %s203_s23, 128  }
  0x73   : > { %454 = vsyncadd (!%p301_p5), %s203_s23, 4294967168  ;;  %p16_p10 = scmp.ge.s32.totalorder %s537_s20, 4   ;;  %s713_s9 = smov %s461_s10 }
  0x74   : > { %s714_s10 = smov %s465_s11  ;;  %s715_s11 = smov %s573_s7 }
  0x75   : > { %s716_s12 = smov %s537_s20  ;;  %18 = sbr.rel (!%p16_p10) target bundleno = 6 (0x6), region = 77 }
  0x7c   :  { %208 = vsyncpa [#allocation3], 1 }
  0x7d   :  { %210 = vsyncpa [#allocation3 + $0x1], 1 }
  0x7e   :  { %211 = vsyncpa [#allocation6], 1 }
  0x7f   :  { %212 = vsyncpa [#allocation4], 1 }
  0x80   :  { %214 = vsyncpa [#allocation4 + $0x1], 1 }

// kernel: tpu_custom_call.1
= control target key start
LH: loop header
LB: loop body
LE: loop exit
PB: predicated region body
PF: predicated region fallthrough
CT: control target
= control target key end

     0   :  { %10 = vsyncpa [#allocation3], 0  ;;  %s905_s0 = inlined_call_operand.vmem [shape: f32[10,32], index: 0, kind: input, shape index: {}]   ;;  %s906_s1 = inlined_call_operand.vmem [shape: f32[32,128], index: 1, kind: input, shape index: {}]   ;;  %s907_s2 = inlined_call_operand.vmem [shape: f32[1,128], index: 2, kind: input, shape index: {}]   ;;  %s908_s3 = inlined_call_operand.vmem [shape: f32[128,16], index: 3, kind: input, shape index: {}]   ;;  %s909_s4 = inlined_call_operand.vmem [shape: f32[1,16], index: 4, kind: input, shape index: {}]   ;;  %s910_s5 = inlined_call_operand.hbm [shape: f32[10,16], index: 5, kind: output, shape index: {}]  }
   0x1   :  { %12 = vsyncpa [#allocation3 + $0x1], 0  ;;  %s739_s18 = smov 0   ;;  %s741_s19 = smov 0  }
   0x2   :  { %s743_s20 = smov 0   ;;  %s745_s21 = smov 0  }
   0x3 LB: > { %s760_s22 = sadd.s32 4294967295, %s703_s21   ;;  %s481_s23 = sadd.s32 4294967294, %s703_s21   ;;  %s703_s21 = sphi %s745_s21, %s916_s21   ;;  %s699_s20 = sphi %s743_s20, %s915_s20   ;;  %s695_s19 = sphi %s741_s19, %s914_s19   ;;  %s691_s18 = sphi %s739_s18, %s913_s18  }
   0x4   : > { %s764_s24 = sadd.s32 1, %s703_s21   ;;  %s135_s25 = sadd.s32 1, %s699_s20 }
   0x5   : > { %s132_s26 = ssub.s32 %s703_s21, %s764_s24  ;;  %p145_p0 = scmp.ne.s32.totalorder %s699_s20, %s695_s19 }
   0x6   : > { %p133_p1 = scmp.eq.s32.totalorder %s132_s26, 0  ;;  %p146_p2 = scmp.eq.s32.totalorder %s760_s22, 1 }
   0x7   : > { %p151_p3 = scmp.ne.s32.totalorder %s695_s19, %s691_s18  ;;  %p152_p4 = scmp.eq.s32.totalorder %s481_s23, 1 }
   0x8   : > { %s775_s27 = scalar_select %p133_p1, %s699_s20, %s135_s25  }
   0x9   : > { %p777_p5 = por %p146_p2, %p145_p0  ;;  %p781_p6 = por %p152_p4, %p151_p3 }
   0xa   : > { %p484_p7 = scmp.ge.s32.totalorder %s703_s21, 1  ;;  %p189_p8 = scmp.lt.s32.totalorder %s703_s21, 3 }
   0xc   : > { %p190_p9 = pnand %p484_p7, %p189_p8 }
   0xd   : > { %v221_v0 = vld [vmem:[%s906_s1] sm:$0xff] (!%p190_p9)  ;;  %v222_v1 = vld [vmem:[%s906_s1 + $0x8] sm:$0xff] (!%p190_p9)  ;;  %v223_v2 = vld [vmem:[%s906_s1 + $0x10] sm:$0xff] (!%p190_p9)  ;;  %v705_v3 = vmov (!%p190_p9), 0.0|0.0   ;;  %vm706_vm0 = vmmov (!%p190_p9), 0   ;;  %v707_v6 = vmov (!%p190_p9), 0.0  }
   0xe   : > { %193 = sbr.rel (%p190_p9) target bundleno = 505 (0x1f9), region = 40  ;;  %563 = vmatprep.subr.bf16.mxu0 (!%p190_p9), %v705_v3  ;;  %v564_v4 = vpack.c.bf16 (!%p190_p9), %v222_v1, %v221_v0  ;;  %v224_v5 = vld [vmem:[%s906_s1 + $0x18] sm:$0xff] (!%p190_p9)  ;;  %525 = vmatprep.mubr.msk.f32.mxu0 (!%p190_p9), %vm706_vm0, %v707_v6  ;;  %p216_p10 = scmp.lt.s32.totalorder (!%p190_p9), %s760_s22, 1  ;;  %v307_v7 = vld [vmem:[%s908_s3] sm:$0xff] (!%p190_p9)  ;;  %v308_v8 = vld [vmem:[%s908_s3 + $0x8] sm:$0xff] (!%p190_p9)  ;;  %vm232_vm1 = vcmask (!%p190_p9), 261120  }
   0xf   : > { %569 = vmatprep.subr.bf16.mxu1 (!%p190_p9), %v705_v3  ;;  %v570_v9 = vpack.c.bf16 (!%p190_p9), %v308_v8, %v307_v7  ;;  %v309_v10 = vld [vmem:[%s908_s3 + $0x10] sm:$0xff] (!%p190_p9)  ;;  %v310_v11 = vld [vmem:[%s908_s3 + $0x18] sm:$0xff] (!%p190_p9)  ;;  %560 = vmatprep.mubr.msk.f32.mxu1 (!%p190_p9), %vm706_vm0, %v707_v6  ;;  %v567_v12 = vpack.c.bf16 (!%p190_p9), %v224_v5, %v223_v2  ;;  %v311_v14 = vld [vmem:[%s908_s3 + $0x20] sm:$0xff] (!%p190_p9)  ;;  %s492_s8 = sshll.u32 (!%p190_p9), %s760_s22, 7  ;;  %vm406_vm2 = vcmask (!%p190_p9), 130048  }
  0x10   : > { %565 = vmatpush3.bf16.msra.mxu0 (!%p190_p9), %v564_v4  ;;  %v573_v13 = vpack.c.bf16 (!%p190_p9), %v310_v11, %v309_v10  ;;  %v312_v15 = vld [vmem:[%s908_s3 + $0x28] sm:$0xff] (!%p190_p9)  ;;  %v313_v18 = vld [vmem:[%s908_s3 + $0x30] sm:$0xff] (!%p190_p9)  ;;  %v314_v19 = vld [vmem:[%s908_s3 + $0x38] sm:$0xff] (!%p190_p9) }
  0x11   : > { %566 = vmatprep.subr.bf16.mxu0 (!%p190_p9), %v705_v3  ;;  %571 = vmatpush3.bf16.msra.mxu1 (!%p190_p9), %v570_v9  ;;  %v576_v17 = vpack.c.bf16 (!%p190_p9), %v312_v15, %v311_v14  ;;  %v579_v20 = vpack.c.bf16 (!%p190_p9), %v314_v19, %v313_v18  ;;  %v315_v21 = vld [vmem:[%s908_s3 + $0x40] sm:$0xff] (!%p190_p9)  ;;  %v316_v22 = vld [vmem:[%s908_s3 + $0x48] sm:$0xff] (!%p190_p9)  ;;  %v317_v24 = vld [vmem:[%s908_s3 + $0x50] sm:$0xff] (!%p190_p9) }
  0x12   : > { %572 = vmatprep.subr.bf16.mxu1 (!%p190_p9), %v705_v3  ;;  %v582_v23 = vpack.c.bf16 (!%p190_p9), %v316_v22, %v315_v21  ;;  %v318_v25 = vld [vmem:[%s908_s3 + $0x58] sm:$0xff] (!%p190_p9)  ;;  %v319_v27 = vld [vmem:[%s908_s3 + $0x60] sm:$0xff] (!%p190_p9)  ;;  %v320_v28 = vld [vmem:[%s908_s3 + $0x68] sm:$0xff] (!%p190_p9) }
  0x13   : > { %v585_v26 = vpack.c.bf16 (!%p190_p9), %v318_v25, %v317_v24  ;;  %v588_v29 = vpack.c.bf16 (!%p190_p9), %v320_v28, %v319_v27  ;;  %v321_v30 = vld [vmem:[%s908_s3 + $0x70] sm:$0xff] (!%p190_p9)  ;;  %v322_v31 = vld [vmem:[%s908_s3 + $0x78] sm:$0xff] (!%p190_p9)  ;;  %v487_v33 = vld [vmem:[%s907_s2] ss:$0 sm:$0xff] (!%p190_p9) }
  0x14   : > { %568 = vmatpush3.bf16.msra.mxu0 (!%p190_p9), %v567_v12  ;;  %v591_v32 = vpack.c.bf16 (!%p190_p9), %v322_v31, %v321_v30  ;;  %v489_v38 = vld [vmem:[%s909_s4] ss:$0 sm:$0xff] (!%p190_p9) }
  0x15   : > { %s217_s30 = scalar_select %p216_p10, %s760_s22, 1  ;;  %574 = vmatpush3.bf16.msra.mxu1 %v573_v13 }
  0x16   : > { %575 = vmatprep.subr.bf16.mxu1 %v705_v3  ;;  %s708_s22 = smov [#allocation2]  }
  0x17   : > { %s486_s6 = sshll.u32 %s217_s30, 3  ;;  %s645_s16 = sshll.u32 %s708_s22, 4  ;;  %s646_s16 = int_to_ptr.vmem [resolvable:$false] %s645_s16 }
  0x18   : > { %s219_s13 = scalar_lea.vmem %s905_s0, %s486_s6  ;;  %s213_s6 = sand.u32 1, %s695_s19  }
  0x19   : > { %v220_v16 = vld [vmem:[%s219_s13] sm:$0xff]  ;;  %577 = vmatpush3.bf16.msra.mxu1 %v576_v17  ;;  %s485_s7 = sshll.u32 %s213_s6, 3  ;;  %s863_s13 = scalar_lea.hbm %s910_s5, %s492_s8 }
  0x1a   : > { %526 = vmatmul.mubr.msk.f32.vlgmr.msra.gmra.mrb[0].mxu0 %vm232_vm1, %v220_v16  ;;  %578 = vmatprep.subr.bf16.mxu1 %v705_v3  ;;  %s215_s9 = scalar_lea.vmem [#allocation2], %s485_s7  ;;  %s409_s14 = scalar_lea.sflag [#allocation3], %s213_s6 }
  0x1b   : > { %s422_s10 = sshll.u32 %s215_s9, 4  ;;  %s647_s17 = scalar_lea.vmem %s646_s16, 256  ;;  %s865_s10 = int_to_ptr.vmem [resolvable:$true] %s422_s10 }
  0x1c   : > { %s641_s15 = scalar_lea.vmem %s865_s10, 128  ;;  %p648_p0 = scmp.lt.s32.totalorder %s865_s10, %s646_s16 }
  0x1d   : > { %580 = vmatpush3.bf16.msra.mxu1 %v579_v20  ;;  %p642_p11 = scmp.ne.s32.totalorder %s865_s10, %s641_s15  ;;  %p649_p1 = scmp.lt.s32.totalorder %s647_s17, %s641_s15 }
  0x1e   : > { %581 = vmatprep.subr.bf16.mxu1 %v705_v3 }
  0x1f   : > { %p643_p12 = pnand %p642_p11, %p777_p5  ;;  %p650_p2 = por %p649_p1, %p648_p0 }
  0x21   : > { %583 = vmatpush3.bf16.msra.mxu1 %v582_v23  ;;  %p644_p13 = pneg %p643_p12 }
  0x22   : > { %584 = vmatprep.subr.bf16.mxu1 %v705_v3 }
  0x23   : > { %p651_p3 = pnand %p650_p2, %p644_p13 }
  0x25   : > { %586 = vmatpush3.bf16.msra.mxu1 %v585_v26 }
  0x26   : > { %587 = vmatprep.subr.bf16.mxu1 %v705_v3 }
  0x29   : > { %589 = vmatpush3.bf16.msra.mxu1 %v588_v29 }
  0x2a   : > { %590 = vmatprep.subr.bf16.mxu1 %v705_v3 }
  0x2d   : > { %592 = vmatpush3.bf16.msra.mxu1 %v591_v32 }
  0xed   : > { %v302_v34 = vpop.f32.mrb[0].mxu0 }
  0xee   : > { %v303_v35 = vadd.f32 %v487_v33, %v302_v34  ;;  %v527_v36 = vpop.f32.mrb[1].mxu0 }
  0xf0   : > { %635 = vtanh.f32 %v303_v35 }
  0xfa   : > { %v636_v37 = vpop.eup %635 }
  0xfb   : > { %561 = vmatmul.mubr.f32.vlgmr.msra.gmra.mrb[0].mxu1 %v636_v37 }
 0x1ce   : > { %v396_v39 = vpop.f32.mrb[0].mxu1 }
 0x1cf   : > { %v397_v40 = vadd.f32 %v489_v38, %v396_v39  ;;  %v562_v41 = vpop.f32.mrb[1].mxu1 }
 0x1d1   : > { %v490_v42 = vmul.f32 -1.442695, %v397_v40 }
 0x1d3   : > { %637 = vpow2.f32 %v490_v42 }
 0x1dd   : > { %v638_v43 = vpop.eup %637 }
 0x1de   : > { %v403_v44 = vadd.f32 1.0, %v638_v43 }
 0x1e0   : > { %639 = vrcp.f32 %v403_v44 }
 0x1ea   : > { %v640_v45 = vpop.eup %639 }
 0x1eb   : > { %407 = vst.msk [vmem:[%s215_s9] sm:$0xff] %vm406_vm2, %v640_v45 }
 0x1ec   : > { %654 = shalt.err (!%p651_p3)
}
 0x1ed   : > { %s655_s23 = scalar_lea.hbm %s863_s13, 128  ;;  %s659_s30 = scalar_lea.hbm %s910_s5, 256 }
 0x1ee   : > { %p656_p4 = scmp.ne.s32.totalorder %s863_s13, %s655_s23  ;;  %p660_p9 = scmp.lt.u32.totalorder %s863_s13, %s910_s5 }
 0x1ef   : > { %p661_p10 = scmp.lt.u32.totalorder %s659_s30, %s655_s23  ;;  %p663_p12 = scmp.lt.u32.totalorder %s655_s23, %s863_s13 }
 0x1f0   : > { %p657_p7 = pnand %p656_p4, %p777_p5 }
 0x1f1   : > { %p662_p11 = por %p661_p10, %p660_p9 }
 0x1f2   : > { %p658_p8 = pneg %p657_p7 }
 0x1f3   : > { %p664_p13 = por %p663_p12, %p662_p11 }
 0x1f5   : > { %p665_p0 = pnand %p664_p13, %p658_p8 }
 0x1f7   : > { %668 = shalt.err (!%p665_p0)
}
 0x1f8   : > { %593 = dma.vmem_to_hbm [thread:$0]  (%p777_p5), %s865_s10, 128, %s863_s13, %s409_s14  }
 0x1f9 PF: > { %p599_p1 = scmp.ge.s32.totalorder %s703_s21, 2  ;;  %s434_s8 = sand.u32 1, %s691_s18  }
 0x1fa   : > { %s435_s9 = scalar_lea.sflag [#allocation3], %s434_s8 }
 0x1fb   : > { %p596_p2 = pnand %p599_p1, %p781_p6 }
 0x1fd   : > { %686 = dma.done.wait (!%p596_p2), %s435_s9, 128  }
 0x1fe   : > { %688 = vsyncadd (!%p596_p2), %s435_s9, 4294967168  ;;  %p15_p3 = scmp.ge.s32.totalorder %s764_s24, 4   ;;  %s913_s18 = smov %s695_s19 }
 0x1ff   : > { %s914_s19 = smov %s699_s20  ;;  %s915_s20 = smov %s775_s27 }
 0x200   : > { %s916_s21 = smov %s764_s24  ;;  %17 = sbr.rel (!%p15_p3) target bundleno = 3 (0x3), region = 75 }
 0x207   :  { %440 = vsyncpa [#allocation3], 1 }
 0x208   :  { %442 = vsyncpa [#allocation3 + $0x1], 1 }

</bundles_post_ra>
